<compile_context>
chip_gen: v5e
topology: v5e:2x2
jax: 0.10.0
libtpu: 0.0.40
codegen_flags: <defaults>
</compile_context>

<pallas_src>
import math

import jax
import jax.numpy as jnp
from jax.experimental import pallas as pl
from jax.experimental.pallas import tpu as pltpu


def _round_up(x, m):
    return ((x + m - 1) // m) * m


# ----------------------------- kernels ------------------------------------ #

def _mm_sub_kernel(z_ref, bid_ref, style_ref, o_ref):
    # s = batchid @ style on the MXU (K is tiny; the kernel is HBM-bound so the
    # matmul shape is irrelevant), fused with the VPU subtraction.
    s = jnp.dot(bid_ref[...], style_ref[...],
                preferred_element_type=jnp.float32)
    o_ref[...] = (z_ref[...] - s).astype(o_ref.dtype)


def _sub_kernel(z_ref, style_ref, o_ref):
    # n_batch == 1 path: the single style row broadcasts over the tile rows.
    o_ref[...] = (z_ref[...] - style_ref[...]).astype(o_ref.dtype)


# ----------------------------- wrapper ------------------------------------ #

_DEFAULT_TILE_ROWS = 2048            # packed rows per grid step
_VMEM_LIMIT_BYTES = 32 * 1024 * 1024  # safe on v5e / v6e / v7x


def _lane_pack_factor(z_dim):
    """How many logical rows to fold into one lane-dense (multiple-of-128) row."""
    if z_dim % 128 == 0:
        return 1
    if 128 % z_dim == 0:
        return 128 // z_dim
    return 1  # fall back: keep last dim as full array extent (still compiles)


def style_block_forward(z, batchid, style, *, tile_rows=_DEFAULT_TILE_ROWS):
    """Pallas implementation of StyleBlock.forward."""
    N, z_dim = z.shape
    n_batch = style.shape[0]
    out_dtype = z.dtype
    itemsize = jnp.dtype(out_dtype).itemsize

    # ---- lane-dense repack: fold k consecutive rows into one wide row -------
    k = _lane_pack_factor(z_dim)
    rows = -(-N // k)                                    # packed rows needed
    tile = min(_round_up(tile_rows, 8), _round_up(rows, 8))
    padded_rows = _round_up(rows, tile)
    padded_n = padded_rows * k
    pad = padded_n - N

    if pad:
        z = jnp.pad(z, ((0, pad), (0, 0)))
    zp = z.reshape(padded_rows, k * z_dim)               # lane-dense rows
    dp = k * z_dim
    grid = (padded_rows // tile,)

    cparams = pltpu.CompilerParams(
        dimension_semantics=("parallel",),               # megacore on v7x
        vmem_limit_bytes=_VMEM_LIMIT_BYTES,
    )

    if n_batch == 1:
        style_p = jnp.tile(style.astype(out_dtype), (1, k))      # (1, k*z_dim)
        cost = pl.CostEstimate(
            flops=padded_rows * dp,
            transcendentals=0,
            bytes_accessed=(2 * padded_rows * dp + dp) * itemsize,
        )
        out_p = pl.pallas_call(
            _sub_kernel,
            out_shape=jax.ShapeDtypeStruct((padded_rows, dp), out_dtype),
            grid=grid,
            in_specs=[
                pl.BlockSpec((tile, dp), lambda i: (i, 0)),
                pl.BlockSpec((1, dp), lambda i: (0, 0)),          # resident
            ],
            out_specs=pl.BlockSpec((tile, dp), lambda i: (i, 0)),
            compiler_params=cparams,
            cost_estimate=cost,
        )(zp, style_p)
    else:
        if pad:
            batchid = jnp.pad(batchid, ((0, pad), (0, 0)))
        bidp = batchid.reshape(padded_rows, k * n_batch)          # row-packed one-hots
        kp = k * n_batch
        # Block-diagonal packed style: packed slot j only sees style rows for slot j,
        # so bidp @ style_p reproduces per-row style gather exactly.
        style_p = jnp.kron(jnp.eye(k, dtype=style.dtype), style).astype(out_dtype)
        cost = pl.CostEstimate(
            flops=2 * padded_rows * kp * dp + padded_rows * dp,
            transcendentals=0,
            bytes_accessed=(2 * padded_rows * dp + padded_rows * kp + kp * dp) * itemsize,
        )
        out_p = pl.pallas_call(
            _mm_sub_kernel,
            out_shape=jax.ShapeDtypeStruct((padded_rows, dp), out_dtype),
            grid=grid,
            in_specs=[
                pl.BlockSpec((tile, dp), lambda i: (i, 0)),
                pl.BlockSpec((tile, kp), lambda i: (i, 0)),
                pl.BlockSpec((kp, dp), lambda i: (0, 0)),         # resident
            ],
            out_specs=pl.BlockSpec((tile, dp), lambda i: (i, 0)),
            compiler_params=cparams,
            cost_estimate=cost,
        )(zp, bidp, style_p)

    return out_p.reshape(padded_n, z_dim)[:N]


def init_style(key, n_batch, z_dim, dtype=jnp.float32):
    """Deterministic reproduction of reset_parameters(): U(-1/sqrt(z_dim), +1/sqrt(z_dim))."""
    stdv = 1.0 / math.sqrt(z_dim)
    return jax.random.uniform(key, (n_batch, z_dim), dtype=dtype,
                              minval=-stdv, maxval=stdv)


# ------------------------------- demo -------------------------------------- #

if __name__ == "__main__":
    key = jax.random.PRNGKey(0)
    k_style, k_z, k_id, k_style1, k_z1, k_z2, k_id2 = jax.random.split(key, 7)

    # ---- multi-batch path (n_batch > 1) ----
    N, n_batch, z_dim = 8, 4, 32
    style = init_style(k_style, n_batch, z_dim)
    z = jax.random.normal(k_z, (N, z_dim), dtype=jnp.float32)
    batch_idx = jax.random.randint(k_id, (N,), 0, n_batch)
    batchid = jax.nn.one_hot(batch_idx, n_batch, dtype=jnp.float32)

    out = jax.block_until_ready(style_block_forward(z, batchid, style))
    ref = z - batchid @ style
    assert out.shape == ref.shape and out.dtype == ref.dtype
    assert jnp.allclose(out, ref, atol=1e-5, rtol=1e-5)

    # ---- single-batch path (n_batch == 1) ----
    style1 = init_style(k_style1, 1, z_dim)
    z1 = jax.random.normal(k_z1, (N, z_dim), dtype=jnp.float32)
    out1 = jax.block_until_ready(style_block_forward(z1, None, style1))
    ref1 = z1 - style1
    assert jnp.allclose(out1, ref1, atol=1e-5, rtol=1e-5)

    # ---- multi-tile grid + row-padding path (small tile forces grid > 1) ----
    N2 = 100
    z2 = jax.random.normal(k_z2, (N2, z_dim), dtype=jnp.float32)
    idx2 = jax.random.randint(k_id2, (N2,), 0, n_batch)
    bid2 = jax.nn.one_hot(idx2, n_batch, dtype=jnp.float32)
    out2 = jax.block_until_ready(
        style_block_forward(z2, bid2, style, tile_rows=8))
    ref2 = z2 - bid2 @ style
    assert out2.shape == ref2.shape
    assert jnp.allclose(out2, ref2, atol=1e-5, rtol=1e-5)

    print("KERNEL_OK")
</pallas_src>

<mosaic_0001>
module attributes {stable_mosaic.version = 11 : i64} {
  func.func @_mm_sub_kernel(%arg0: i32, %arg1: memref<8x128xf32, #tpu.memory_space<vmem>>, %arg2: memref<8x16xf32, #tpu.memory_space<vmem>>, %arg3: memref<16x128xf32, #tpu.memory_space<vmem>>, %arg4: memref<8x128xf32, #tpu.memory_space<vmem>>) attributes {dimension_semantics = [#tpu.dimension_semantics<parallel>], iteration_bounds = array<i64: 1>, scalar_prefetch = 0 : i64, scratch_operands = 0 : i64, tpu.core_type = #tpu.core_type<tc>, window_params = [{transform_indices = @transform_0, window_bounds = array<i64: 8, 128>}, {transform_indices = @transform_1, window_bounds = array<i64: 8, 16>}, {pipeline_mode = #tpu.pipeline_mode<synchronous>, transform_indices = @transform_2, window_bounds = array<i64: 16, 128>}, {transform_indices = @transform_3, window_bounds = array<i64: 8, 128>}]} {
    %c0 = arith.constant 0 : index
    %c0_0 = arith.constant 0 : index
    %0 = vector.load %arg2[%c0, %c0_0] : memref<8x16xf32, #tpu.memory_space<vmem>>, vector<8x16xf32>
    %c0_1 = arith.constant 0 : index
    %c0_2 = arith.constant 0 : index
    %1 = vector.load %arg3[%c0_1, %c0_2] : memref<16x128xf32, #tpu.memory_space<vmem>>, vector<16x128xf32>
    %cst = arith.constant dense<0.000000e+00> : vector<8x128xf32>
    %2 = tpu.matmul %0, %1, %cst {dimension_numbers = #tpu.dot_dimension_numbers<[1], [0], [0], [1], [0, 0, 1, 1], [], []>} : vector<8x16xf32>, vector<16x128xf32>, vector<8x128xf32> -> vector<8x128xf32>
    %c0_3 = arith.constant 0 : index
    %c0_4 = arith.constant 0 : index
    %3 = vector.load %arg1[%c0_3, %c0_4] : memref<8x128xf32, #tpu.memory_space<vmem>>, vector<8x128xf32>
    %4 = arith.subf %3, %2 : vector<8x128xf32>
    %c0_5 = arith.constant 0 : index
    %c0_6 = arith.constant 0 : index
    %5 = vector.load %arg4[%c0_5, %c0_6] : memref<8x128xf32, #tpu.memory_space<vmem>>, vector<8x128xf32>
    tpu.vector_store %arg4[%c0_5, %c0_6], %4 {strides = array<i32>} : memref<8x128xf32, #tpu.memory_space<vmem>>, vector<8x128xf32>,
    return
  }
  func.func @transform_0(%arg0: i32) -> (i32, i32) {
    %c0_i32 = arith.constant 0 : i32
    %c0_i32_0 = arith.constant 0 : i32
    return %arg0, %c0_i32 : i32, i32
  }
  func.func @transform_1(%arg0: i32) -> (i32, i32) {
    %c0_i32 = arith.constant 0 : i32
    %c0_i32_0 = arith.constant 0 : i32
    return %arg0, %c0_i32 : i32, i32
  }
  func.func @transform_2(%arg0: i32) -> (i32, i32) {
    %c0_i32 = arith.constant 0 : i32
    %c0_i32_0 = arith.constant 0 : i32
    %c0_i32_1 = arith.constant 0 : i32
    return %c0_i32, %c0_i32_0 : i32, i32
  }
  func.func @transform_3(%arg0: i32) -> (i32, i32) {
    %c0_i32 = arith.constant 0 : i32
    %c0_i32_0 = arith.constant 0 : i32
    return %arg0, %c0_i32 : i32, i32
  }
}

</mosaic_0001>

<bundles_post_ra>
// kernel: tpu_custom_call.1
= control target key start
LH: loop header
LB: loop body
LE: loop exit
PB: predicated region body
PF: predicated region fallthrough
CT: control target
= control target key end

     0   :  { %8 = vsyncpa [#allocation3], 0  ;;  %s253_s0 = inlined_call_operand.hbm [shape: f32[8,128], index: 0, kind: input, shape index: {}]   ;;  %s254_s1 = inlined_call_operand.hbm [shape: f32[8,16], index: 1, kind: input, shape index: {}]   ;;  %s255_s2 = inlined_call_operand.hbm [shape: f32[16,128], index: 2, kind: input, shape index: {}]   ;;  %s256_s3 = inlined_call_operand.hbm [shape: f32[8,128], index: 3, kind: output, shape index: {}]  }
   0x1   :  { %9 = vsyncpa [#allocation6], 0  ;;  %s27_s14 = sshll.u32 %s254_s1, 4  ;;  %s28_s14 = int_to_ptr.hbm [resolvable:$true] %s27_s14 }
   0x2   :  { %10 = vsyncpa [#allocation4], 0  ;;  %s215_s15 = smov [#allocation5]   ;;  %s16_s19 = sshll.u32 %s253_s0, 4  ;;  %s17_s19 = int_to_ptr.hbm [resolvable:$true] %s16_s19 }
   0x3   :  { %s29_s16 = sshll.u32 %s215_s15, 4  ;;  %s216_s20 = smov [#allocation2]   ;;  %s30_s16 = int_to_ptr.vmem [resolvable:$true] %s29_s16 }
   0x4   :  { %32 = dma.hbm_to_vmem [thread:$0]  %s28_s14, 128, %s30_s16, [#allocation6]  }
   0x5   :  { %s18_s21 = sshll.u32 %s216_s20, 4  ;;  %s37_s24 = sshll.u32 %s255_s2, 4  ;;  %s19_s21 = int_to_ptr.vmem [resolvable:$true] %s18_s21  ;;  %s38_s24 = int_to_ptr.hbm [resolvable:$true] %s37_s24 }
   0x6   :  { %21 = dma.hbm_to_vmem [thread:$0]  %s17_s19, 128, %s19_s21, [#allocation3]  }
   0x7   :  { %s217_s1 = smov [#allocation7]   ;;  %s218_s26 = smov 128  }
   0x8   :  { %s39_s25 = sshll.u32 %s217_s1, 4  ;;  %s219_s27 = smov 8   ;;  %s40_s25 = int_to_ptr.vmem [resolvable:$true] %s39_s25 }
   0x9   :  { %45 = dma.hbm_to_vmem [thread:$0]  %s38_s24, 256, %s40_s25, [#allocation6], %s218_s26, %s218_s26, %s219_s27  }
   0xa   :  { %209 = dma.done.wait [#allocation3], 128  }
   0xb   :  { %210 = vsyncadd [#allocation3], 4294967168 }
   0xc   :  { %211 = dma.done.wait [#allocation6], 384  }
   0xd   :  { %212 = vsyncadd [#allocation6], 4294966912  ;;  %v60_v0 = vld [vmem:[#allocation7 + $0x8] sm:$0xff]  ;;  %v59_v1 = vld [vmem:[#allocation7] sm:$0xff]  ;;  %vm61_vm0 = vcmask 130048   ;;  %s220_s0 = smov [#allocation8]  }
   0xe   :  { %79 = vmatpush.msra.mxu0 %v60_v0  ;;  %v58_v2 = vld [vmem:[#allocation5] sm:$0xff]  ;;  %v85_v3 = vld [vmem:[#allocation2] sm:$0xff]  ;;  %s93_s2 = sshll.u32 %s220_s0, 4  ;;  %s95_s30 = sshll.u32 %s256_s3, 4  ;;  %s94_s2 = int_to_ptr.vmem [resolvable:$true] %s93_s2  ;;  %s96_s30 = int_to_ptr.hbm [resolvable:$true] %s95_s30 }
  0x10   :  { %80 = vmatpush.msra.mxu0 %v59_v1 }
  0x11   :  { %106 = vmatmul.msk.f32.vlgmr.msra.gmra.mxu0 %vm61_vm0, %v58_v2 }
  0x8e   :  { %v82_v4 = vpop.f32.mrf.mxu0 }
  0x8f   :  { %v86_v5 = vsub.f32 %v85_v3, %v82_v4 }
  0x91   :  { %87 = vst [vmem:[#allocation8] sm:$0xff] %v86_v5 }
  0x92   :  { %98 = dma.vmem_to_hbm [thread:$0]  %s94_s2, 128, %s96_s30, [#allocation4]  }
  0x93   :  { %213 = dma.done.wait [#allocation4], 128  }
  0x94   :  { %214 = vsyncadd [#allocation4], 4294967168 }
  0x95   :  { %103 = vsyncpa [#allocation3], 1 }
  0x96   :  { %104 = vsyncpa [#allocation6], 1 }
  0x97   :  { %105 = vsyncpa [#allocation4], 1 }

</bundles_post_ra>
